<compile_context>
chip_gen: v5e
topology: v5e:2x2
jax: 0.10.0
libtpu: 0.0.40
codegen_flags: <defaults>
</compile_context>

<pallas_src>
import numpy as np
import jax
import jax.numpy as jnp
from jax.experimental import pallas as pl
from jax.experimental.pallas import tpu as pltpu


# ---------------------------------------------------------------------------
# Synthetic data_hub (deterministic). Features/outputs are concatenations over
# irreps (l, mul) of mul*(2l+1) channels; R has mul_out*mul_in weights per
# (l_out, l_in, l_f) path; Ys is indexed by l*l + m.
# ---------------------------------------------------------------------------
def build_data_hub():
    A = 8            # atoms
    NEIGH = 4        # incoming edges per atom
    P = A * NEIGH    # edges (pairs a <- b)
    Ls = [0, 1]
    mul_in = {0: 4, 1: 2}
    mul_out = {0: 4, 1: 2}
    MAX_LF = 2

    QP = 128         # padded basis width (lanes)
    DOUTP = 128      # padded output width (lanes)

    def offsets(muls):
        offs, d = {}, 0
        for l in Ls:
            offs[l] = d
            d += muls[l] * (2 * l + 1)
        return offs, d

    in_off, DIN = offsets(mul_in)      # DIN = 10
    out_off, DOUT = offsets(mul_out)   # DOUT = 10

    rng = np.random.default_rng(0)

    # paths (l_out, l_in, l_f) with |lo - li| <= lf <= min(lo + li, MAX_LF)
    paths, r_off = [], 0
    for lo in Ls:
        for li in Ls:
            for lf in range(abs(lo - li), min(lo + li, MAX_LF) + 1):
                # TODO(synk): real Clebsch-Gordan / wigner-3j tables live in the
                # opaque data_hub; deterministic synthetic values are used here.
                cg = rng.standard_normal((2*lo+1, 2*li+1, 2*lf+1)).astype(np.float32)
                norm = np.float32(1.0 / np.sqrt(mul_in[li] * (2 * lf + 1)))
                paths.append((lo, li, lf, r_off, cg, norm))
                r_off += mul_out[lo] * mul_in[li]
    DR = r_off                          # 44
    YDIM = (MAX_LF + 1) ** 2            # 9

    # Flatten the basis: q runs over (path, u, v, m_f).
    #   K_p[o, i] = sum_q C[p, q] * W3[q, o, i]
    #   C[p, q]   = R[p, r_idx[q]] * Y[p, y_idx[q]]
    W_rows, r_idx, y_idx = [], [], []
    for lo, li, lf, roff, cg, norm in paths:
        for u in range(mul_out[lo]):
            for v in range(mul_in[li]):
                for mf in range(2 * lf + 1):
                    Wq = np.zeros((DOUT, DIN), np.float32)
                    for mo in range(2 * lo + 1):
                        for mi in range(2 * li + 1):
                            Wq[out_off[lo] + u*(2*lo+1) + mo,
                               in_off[li] + v*(2*li+1) + mi] = norm * cg[mo, mi, mf]
                    W_rows.append(Wq)
                    r_idx.append(roff + u*mul_in[li] + v)
                    y_idx.append(lf*lf + mf)
    W3 = np.stack(W_rows, 0)                               # (Q, DOUT, DIN)
    Q = W3.shape[0]                                        # 100
    assert Q <= QP and DOUT <= DOUTP
    r_idx = np.asarray(r_idx, np.int32)
    y_idx = np.asarray(y_idx, np.int32)

    # Edge connectivity (map_ab_p_to_a = destination, map_ab_p_to_b = source).
    map_a = np.repeat(np.arange(A, dtype=np.int32), NEIGH)
    map_b = rng.integers(0, A, size=(P,)).astype(np.int32)
    Ys = rng.standard_normal((P, YDIM)).astype(np.float32)
    n_norm = np.full((A,), 1.0 / np.sqrt(NEIGH), np.float32)

    # Per-i basis slabs, lane-dense, bf16 (dominant bytes halved; MXU-native):
    #   W2[i, q, o] = W3[q, o, i], zero padded to (DIN, QP, DOUTP).
    W2 = np.zeros((DIN, QP, DOUTP), np.float32)
    W2[:, :Q, :DOUT] = np.transpose(W3, (2, 0, 1))

    # One-hot radial selector (C_r = R @ Gr built on the MXU in-kernel).
    Gr = np.zeros((DR, QP), np.float32)
    Gr[r_idx, np.arange(Q)] = 1.0

    # Packed constant slab (ONE DMA): rows are 8-aligned blocks
    #   [0:P)        Cy  = Ys[:, y_idx]   (precomputed exactly offline)
    #   [P:2P)       S_b source one-hot   (lanes [0:A))
    #   [2P:2P+A)    S_a^T * n_norm       (lanes [0:P)), pre-transposed
    #   [2P+A:...)   Gr
    assert A % 8 == 0 and P % 8 == 0
    CY_OFF, SB_OFF, SAT_OFF, GR_OFF = 0, P, 2 * P, 2 * P + A
    SLAB_ROWS = ((GR_OFF + DR + 7) // 8) * 8
    slab = np.zeros((SLAB_ROWS, QP), np.float32)
    slab[CY_OFF:CY_OFF + P, :Q] = Ys[:, y_idx]
    slab[SB_OFF:SB_OFF + P, :A] = np.eye(A, dtype=np.float32)[map_b]
    sat = np.zeros((A, P), np.float32)
    sat[map_a, np.arange(P)] = n_norm[map_a]
    slab[SAT_OFF:SAT_OFF + A, :P] = sat
    slab[GR_OFF:GR_OFF + DR, :] = Gr

    return dict(
        A=A, P=P, DIN=DIN, DOUT=DOUT, DR=DR, Q=Q, QP=QP, DOUTP=DOUTP,
        CY_OFF=CY_OFF, SB_OFF=SB_OFF, SAT_OFF=SAT_OFF, GR_OFF=GR_OFF,
        slab=jnp.asarray(slab),                         # (120, 128) f32
        W2=jnp.asarray(W2, dtype=jnp.bfloat16),         # (DIN, 128, 128) bf16
        # kept (numpy) for the exact float64 reference in __main__
        W3=W3, Ys=Ys, r_idx=r_idx, y_idx=y_idx,
        map_a=map_a, map_b=map_b, n_norm=n_norm,
    )


# ---------------------------------------------------------------------------
# Pallas kernel: gridless straight-line body, everything VMEM-resident.
# ---------------------------------------------------------------------------
def _make_kernel(A, P, DIN, DR, CY_OFF, SB_OFF, SAT_OFF, GR_OFF):
    def kernel(r_ref, f_ref, slab_ref, w2_ref, out_ref):
        # Static views into the packed constant slab (one DMA covers them all).
        cy  = slab_ref[CY_OFF:CY_OFF + P, :]        # (P, QP)  Ys[:, y_idx], lane-padded
        sb  = slab_ref[SB_OFF:SB_OFF + P, 0:A]      # (P, A)   source-atom one-hot
        sat = slab_ref[SAT_OFF:SAT_OFF + A, 0:P]    # (A, P)   dest one-hot^T * n_norm
        gr  = slab_ref[GR_OFF:GR_OFF + DR, :]       # (DR, QP) radial-coeff one-hot

        # Per-edge mixing coefficients C = (R @ Gr) * Cy          (P, QP), lane-dense.
        c = jnp.dot(r_ref[...], gr, preferred_element_type=jnp.float32) * cy
        c_bf = c.astype(jnp.bfloat16)               # MXU-native operand for W2 dots

        # Gather source-atom features via one-hot matmul: Fg[p] = F[map_b[p]]  (P, DIN).
        fg = jnp.dot(sb, f_ref[...], preferred_element_type=jnp.float32)

        # Fused basis matmul + DIN contraction: per-i chunk dot followed
        # immediately by its MAC -> no (P, DIN*DOUTP) intermediate in VMEM,
        # MXU push for chunk i+1 overlaps the VPU MAC of chunk i.
        # Two accumulators break the serial vadd chain.
        def chunk(i):
            t_i = jnp.dot(c_bf, w2_ref[i], preferred_element_type=jnp.float32)
            return t_i * fg[:, i:i + 1]             # (P, DOUTP)

        b0, b1 = chunk(0), chunk(1)
        for i in range(2, DIN):
            if i % 2 == 0:
                b0 = b0 + chunk(i)
            else:
                b1 = b1 + chunk(i)
        b = b0 + b1                                  # (P, DOUTP) f32 per-edge messages

        # Scatter-add into destination atoms; S_a pre-transposed so this is a
        # plain dot (no contracting-dim-0 / XLU transpose in the epilogue);
        # n_norm is already folded into sat.  Output is one lane-dense vreg tile.
        out_ref[...] = jnp.dot(sat, b, preferred_element_type=jnp.float32)
    return kernel


def periodic_convolution_with_kernel(features, rbf_coeffs, hub):
    """Forward of PeriodicConvolutionWithKernel: (A, DIN), (P, DR) -> (A, DOUT)."""
    A, DIN = features.shape
    DOUT, DOUTP = hub["DOUT"], hub["DOUTP"]

    vmem = pl.BlockSpec(memory_space=pltpu.MemorySpace.VMEM)
    out_padded = pl.pallas_call(
        _make_kernel(A, hub["P"], DIN, hub["DR"],
                     hub["CY_OFF"], hub["SB_OFF"], hub["SAT_OFF"], hub["GR_OFF"]),
        out_shape=jax.ShapeDtypeStruct((A, DOUTP), jnp.float32),
        in_specs=[vmem] * 4,
        out_specs=vmem,
    )(rbf_coeffs, features, hub["slab"], hub["W2"])
    # slice the lane-padded output back to the real irrep width
    return out_padded[:, :DOUT]


if __name__ == "__main__":
    hub = build_data_hub()
    A, P, DIN, DOUT, DR = hub["A"], hub["P"], hub["DIN"], hub["DOUT"], hub["DR"]

    key = jax.random.PRNGKey(0)
    k_f, k_r = jax.random.split(key)
    features = jax.random.normal(k_f, (A, DIN), dtype=jnp.float32)      # (8, 10)
    rbf_coeffs = jax.random.normal(k_r, (P, DR), dtype=jnp.float32)     # (32, 44)

    out = jax.block_until_ready(
        periodic_convolution_with_kernel(features, rbf_coeffs, hub))

    # Exact float64 numpy reference of the same contraction.
    Rn = np.asarray(rbf_coeffs, np.float64)
    Fn = np.asarray(features, np.float64)
    W3 = np.asarray(hub["W3"], np.float64)
    Ys = np.asarray(hub["Ys"], np.float64)
    C = Rn[:, hub["r_idx"]] * Ys[:, hub["y_idx"]]
    Kp = np.einsum("pq,qoi->poi", C, W3)                 # per-edge kernel
    B = np.einsum("poi,pi->po", Kp, Fn[hub["map_b"]])    # per-edge message
    ref = np.zeros((A, DOUT), np.float64)
    np.add.at(ref, hub["map_a"], B)                      # scatter-add to dest atoms
    ref *= np.asarray(hub["n_norm"], np.float64)[:, None]

    # bf16 weights + bf16 MXU operands -> ~1% relative error; the absolute
    # slack covers cancellation-near-zero outputs (terms are O(1), bf16
    # rounding ~2^-9 per operand accumulated over ~66 products per element).
    np.testing.assert_allclose(np.asarray(out, np.float64), ref,
                               rtol=1e-2, atol=3e-2)
    print("KERNEL_OK")
</pallas_src>

<mosaic_0001>
module attributes {stable_mosaic.version = 11 : i64} {
  func.func @kernel(%arg0: memref<32x44xf32, #tpu.memory_space<vmem>>, %arg1: memref<8x10xf32, #tpu.memory_space<vmem>>, %arg2: memref<120x128xf32, #tpu.memory_space<vmem>>, %arg3: memref<10x128x128xbf16, #tpu.memory_space<vmem>>, %arg4: memref<8x128xf32, #tpu.memory_space<vmem>>) attributes {dimension_semantics = [], scalar_prefetch = 0 : i64, scratch_operands = 0 : i64, tpu.core_type = #tpu.core_type<tc>} {
    %c0 = arith.constant 0 : index
    %c0_0 = arith.constant 0 : index
    %0 = vector.load %arg2[%c0, %c0_0] : memref<120x128xf32, #tpu.memory_space<vmem>>, vector<32x128xf32>
    %c32 = arith.constant 32 : index
    %c0_1 = arith.constant 0 : index
    %1 = vector.load %arg2[%c32, %c0_1] : memref<120x128xf32, #tpu.memory_space<vmem>>, vector<32x8xf32>
    %c64 = arith.constant 64 : index
    %c0_2 = arith.constant 0 : index
    %2 = vector.load %arg2[%c64, %c0_2] : memref<120x128xf32, #tpu.memory_space<vmem>>, vector<8x32xf32>
    %c72 = arith.constant 72 : index
    %c0_3 = arith.constant 0 : index
    %3 = vector.load %arg2[%c72, %c0_3] : memref<120x128xf32, #tpu.memory_space<vmem>>, vector<44x128xf32>
    %c0_4 = arith.constant 0 : index
    %c0_5 = arith.constant 0 : index
    %4 = vector.load %arg0[%c0_4, %c0_5] : memref<32x44xf32, #tpu.memory_space<vmem>>, vector<32x44xf32>
    %cst = arith.constant dense<0.000000e+00> : vector<32x128xf32>
    %5 = tpu.matmul %4, %3, %cst {dimension_numbers = #tpu.dot_dimension_numbers<[1], [0], [0], [1], [0, 0, 1, 1], [], []>} : vector<32x44xf32>, vector<44x128xf32>, vector<32x128xf32> -> vector<32x128xf32>
    %6 = arith.mulf %5, %0 : vector<32x128xf32>
    %7 = arith.truncf %6 : vector<32x128xf32> to vector<32x128xbf16>
    %c0_6 = arith.constant 0 : index
    %c0_7 = arith.constant 0 : index
    %8 = vector.load %arg1[%c0_6, %c0_7] : memref<8x10xf32, #tpu.memory_space<vmem>>, vector<8x10xf32>
    %cst_8 = arith.constant dense<0.000000e+00> : vector<32x10xf32>
    %9 = tpu.matmul %1, %8, %cst_8 {dimension_numbers = #tpu.dot_dimension_numbers<[1], [0], [0], [1], [0, 0, 1, 1], [], []>} : vector<32x8xf32>, vector<8x10xf32>, vector<32x10xf32> -> vector<32x10xf32>
    %c0_9 = arith.constant 0 : index
    %c0_10 = arith.constant 0 : index
    %c0_11 = arith.constant 0 : index
    %10 = vector.load %arg3[%c0_9, %c0_10, %c0_11] : memref<10x128x128xbf16, #tpu.memory_space<vmem>>, vector<1x128x128xbf16>
    %11 = vector.shape_cast %10 : vector<1x128x128xbf16> to vector<128x128xbf16>
    %cst_12 = arith.constant dense<0.000000e+00> : vector<32x128xf32>
    %12 = tpu.matmul %7, %11, %cst_12 {dimension_numbers = #tpu.dot_dimension_numbers<[1], [0], [0], [1], [0, 0, 1, 1], [], []>} : vector<32x128xbf16>, vector<128x128xbf16>, vector<32x128xf32> -> vector<32x128xf32>
    %13 = vector.extract_strided_slice %9 {offsets = [0, 0], sizes = [32, 1], strides = [1, 1]} : vector<32x10xf32> to vector<32x1xf32>
    %14 = vector.broadcast %13 : vector<32x1xf32> to vector<32x128xf32>
    %15 = arith.mulf %12, %14 : vector<32x128xf32>
    %c1 = arith.constant 1 : index
    %c0_13 = arith.constant 0 : index
    %c0_14 = arith.constant 0 : index
    %16 = vector.load %arg3[%c1, %c0_13, %c0_14] : memref<10x128x128xbf16, #tpu.memory_space<vmem>>, vector<1x128x128xbf16>
    %17 = vector.shape_cast %16 : vector<1x128x128xbf16> to vector<128x128xbf16>
    %cst_15 = arith.constant dense<0.000000e+00> : vector<32x128xf32>
    %18 = tpu.matmul %7, %17, %cst_15 {dimension_numbers = #tpu.dot_dimension_numbers<[1], [0], [0], [1], [0, 0, 1, 1], [], []>} : vector<32x128xbf16>, vector<128x128xbf16>, vector<32x128xf32> -> vector<32x128xf32>
    %19 = vector.extract_strided_slice %9 {offsets = [0, 1], sizes = [32, 1], strides = [1, 1]} : vector<32x10xf32> to vector<32x1xf32>
    %20 = vector.broadcast %19 : vector<32x1xf32> to vector<32x128xf32>
    %21 = arith.mulf %18, %20 : vector<32x128xf32>
    %c2 = arith.constant 2 : index
    %c0_16 = arith.constant 0 : index
    %c0_17 = arith.constant 0 : index
    %22 = vector.load %arg3[%c2, %c0_16, %c0_17] : memref<10x128x128xbf16, #tpu.memory_space<vmem>>, vector<1x128x128xbf16>
    %23 = vector.shape_cast %22 : vector<1x128x128xbf16> to vector<128x128xbf16>
    %cst_18 = arith.constant dense<0.000000e+00> : vector<32x128xf32>
    %24 = tpu.matmul %7, %23, %cst_18 {dimension_numbers = #tpu.dot_dimension_numbers<[1], [0], [0], [1], [0, 0, 1, 1], [], []>} : vector<32x128xbf16>, vector<128x128xbf16>, vector<32x128xf32> -> vector<32x128xf32>
    %25 = vector.extract_strided_slice %9 {offsets = [0, 2], sizes = [32, 1], strides = [1, 1]} : vector<32x10xf32> to vector<32x1xf32>
    %26 = vector.broadcast %25 : vector<32x1xf32> to vector<32x128xf32>
    %27 = arith.mulf %24, %26 : vector<32x128xf32>
    %28 = arith.addf %15, %27 : vector<32x128xf32>
    %c3 = arith.constant 3 : index
    %c0_19 = arith.constant 0 : index
    %c0_20 = arith.constant 0 : index
    %29 = vector.load %arg3[%c3, %c0_19, %c0_20] : memref<10x128x128xbf16, #tpu.memory_space<vmem>>, vector<1x128x128xbf16>
    %30 = vector.shape_cast %29 : vector<1x128x128xbf16> to vector<128x128xbf16>
    %cst_21 = arith.constant dense<0.000000e+00> : vector<32x128xf32>
    %31 = tpu.matmul %7, %30, %cst_21 {dimension_numbers = #tpu.dot_dimension_numbers<[1], [0], [0], [1], [0, 0, 1, 1], [], []>} : vector<32x128xbf16>, vector<128x128xbf16>, vector<32x128xf32> -> vector<32x128xf32>
    %32 = vector.extract_strided_slice %9 {offsets = [0, 3], sizes = [32, 1], strides = [1, 1]} : vector<32x10xf32> to vector<32x1xf32>
    %33 = vector.broadcast %32 : vector<32x1xf32> to vector<32x128xf32>
    %34 = arith.mulf %31, %33 : vector<32x128xf32>
    %35 = arith.addf %21, %34 : vector<32x128xf32>
    %c4 = arith.constant 4 : index
    %c0_22 = arith.constant 0 : index
    %c0_23 = arith.constant 0 : index
    %36 = vector.load %arg3[%c4, %c0_22, %c0_23] : memref<10x128x128xbf16, #tpu.memory_space<vmem>>, vector<1x128x128xbf16>
    %37 = vector.shape_cast %36 : vector<1x128x128xbf16> to vector<128x128xbf16>
    %cst_24 = arith.constant dense<0.000000e+00> : vector<32x128xf32>
    %38 = tpu.matmul %7, %37, %cst_24 {dimension_numbers = #tpu.dot_dimension_numbers<[1], [0], [0], [1], [0, 0, 1, 1], [], []>} : vector<32x128xbf16>, vector<128x128xbf16>, vector<32x128xf32> -> vector<32x128xf32>
    %39 = vector.extract_strided_slice %9 {offsets = [0, 4], sizes = [32, 1], strides = [1, 1]} : vector<32x10xf32> to vector<32x1xf32>
    %40 = vector.broadcast %39 : vector<32x1xf32> to vector<32x128xf32>
    %41 = arith.mulf %38, %40 : vector<32x128xf32>
    %42 = arith.addf %28, %41 : vector<32x128xf32>
    %c5 = arith.constant 5 : index
    %c0_25 = arith.constant 0 : index
    %c0_26 = arith.constant 0 : index
    %43 = vector.load %arg3[%c5, %c0_25, %c0_26] : memref<10x128x128xbf16, #tpu.memory_space<vmem>>, vector<1x128x128xbf16>
    %44 = vector.shape_cast %43 : vector<1x128x128xbf16> to vector<128x128xbf16>
    %cst_27 = arith.constant dense<0.000000e+00> : vector<32x128xf32>
    %45 = tpu.matmul %7, %44, %cst_27 {dimension_numbers = #tpu.dot_dimension_numbers<[1], [0], [0], [1], [0, 0, 1, 1], [], []>} : vector<32x128xbf16>, vector<128x128xbf16>, vector<32x128xf32> -> vector<32x128xf32>
    %46 = vector.extract_strided_slice %9 {offsets = [0, 5], sizes = [32, 1], strides = [1, 1]} : vector<32x10xf32> to vector<32x1xf32>
    %47 = vector.broadcast %46 : vector<32x1xf32> to vector<32x128xf32>
    %48 = arith.mulf %45, %47 : vector<32x128xf32>
    %49 = arith.addf %35, %48 : vector<32x128xf32>
    %c6 = arith.constant 6 : index
    %c0_28 = arith.constant 0 : index
    %c0_29 = arith.constant 0 : index
    %50 = vector.load %arg3[%c6, %c0_28, %c0_29] : memref<10x128x128xbf16, #tpu.memory_space<vmem>>, vector<1x128x128xbf16>
    %51 = vector.shape_cast %50 : vector<1x128x128xbf16> to vector<128x128xbf16>
    %cst_30 = arith.constant dense<0.000000e+00> : vector<32x128xf32>
    %52 = tpu.matmul %7, %51, %cst_30 {dimension_numbers = #tpu.dot_dimension_numbers<[1], [0], [0], [1], [0, 0, 1, 1], [], []>} : vector<32x128xbf16>, vector<128x128xbf16>, vector<32x128xf32> -> vector<32x128xf32>
    %53 = vector.extract_strided_slice %9 {offsets = [0, 6], sizes = [32, 1], strides = [1, 1]} : vector<32x10xf32> to vector<32x1xf32>
    %54 = vector.broadcast %53 : vector<32x1xf32> to vector<32x128xf32>
    %55 = arith.mulf %52, %54 : vector<32x128xf32>
    %56 = arith.addf %42, %55 : vector<32x128xf32>
    %c7 = arith.constant 7 : index
    %c0_31 = arith.constant 0 : index
    %c0_32 = arith.constant 0 : index
    %57 = vector.load %arg3[%c7, %c0_31, %c0_32] : memref<10x128x128xbf16, #tpu.memory_space<vmem>>, vector<1x128x128xbf16>
    %58 = vector.shape_cast %57 : vector<1x128x128xbf16> to vector<128x128xbf16>
    %cst_33 = arith.constant dense<0.000000e+00> : vector<32x128xf32>
    %59 = tpu.matmul %7, %58, %cst_33 {dimension_numbers = #tpu.dot_dimension_numbers<[1], [0], [0], [1], [0, 0, 1, 1], [], []>} : vector<32x128xbf16>, vector<128x128xbf16>, vector<32x128xf32> -> vector<32x128xf32>
    %60 = vector.extract_strided_slice %9 {offsets = [0, 7], sizes = [32, 1], strides = [1, 1]} : vector<32x10xf32> to vector<32x1xf32>
    %61 = vector.broadcast %60 : vector<32x1xf32> to vector<32x128xf32>
    %62 = arith.mulf %59, %61 : vector<32x128xf32>
    %63 = arith.addf %49, %62 : vector<32x128xf32>
    %c8 = arith.constant 8 : index
    %c0_34 = arith.constant 0 : index
    %c0_35 = arith.constant 0 : index
    %64 = vector.load %arg3[%c8, %c0_34, %c0_35] : memref<10x128x128xbf16, #tpu.memory_space<vmem>>, vector<1x128x128xbf16>
    %65 = vector.shape_cast %64 : vector<1x128x128xbf16> to vector<128x128xbf16>
    %cst_36 = arith.constant dense<0.000000e+00> : vector<32x128xf32>
    %66 = tpu.matmul %7, %65, %cst_36 {dimension_numbers = #tpu.dot_dimension_numbers<[1], [0], [0], [1], [0, 0, 1, 1], [], []>} : vector<32x128xbf16>, vector<128x128xbf16>, vector<32x128xf32> -> vector<32x128xf32>
    %67 = vector.extract_strided_slice %9 {offsets = [0, 8], sizes = [32, 1], strides = [1, 1]} : vector<32x10xf32> to vector<32x1xf32>
    %68 = vector.broadcast %67 : vector<32x1xf32> to vector<32x128xf32>
    %69 = arith.mulf %66, %68 : vector<32x128xf32>
    %70 = arith.addf %56, %69 : vector<32x128xf32>
    %c9 = arith.constant 9 : index
    %c0_37 = arith.constant 0 : index
    %c0_38 = arith.constant 0 : index
    %71 = vector.load %arg3[%c9, %c0_37, %c0_38] : memref<10x128x128xbf16, #tpu.memory_space<vmem>>, vector<1x128x128xbf16>
    %72 = vector.shape_cast %71 : vector<1x128x128xbf16> to vector<128x128xbf16>
    %cst_39 = arith.constant dense<0.000000e+00> : vector<32x128xf32>
    %73 = tpu.matmul %7, %72, %cst_39 {dimension_numbers = #tpu.dot_dimension_numbers<[1], [0], [0], [1], [0, 0, 1, 1], [], []>} : vector<32x128xbf16>, vector<128x128xbf16>, vector<32x128xf32> -> vector<32x128xf32>
    %74 = vector.extract_strided_slice %9 {offsets = [0, 9], sizes = [32, 1], strides = [1, 1]} : vector<32x10xf32> to vector<32x1xf32>
    %75 = vector.broadcast %74 : vector<32x1xf32> to vector<32x128xf32>
    %76 = arith.mulf %73, %75 : vector<32x128xf32>
    %77 = arith.addf %63, %76 : vector<32x128xf32>
    %78 = arith.addf %70, %77 : vector<32x128xf32>
    %cst_40 = arith.constant dense<0.000000e+00> : vector<8x128xf32>
    %79 = tpu.matmul %2, %78, %cst_40 {dimension_numbers = #tpu.dot_dimension_numbers<[1], [0], [0], [1], [0, 0, 1, 1], [], []>} : vector<8x32xf32>, vector<32x128xf32>, vector<8x128xf32> -> vector<8x128xf32>
    %c0_41 = arith.constant 0 : index
    %c0_42 = arith.constant 0 : index
    %80 = vector.load %arg4[%c0_41, %c0_42] : memref<8x128xf32, #tpu.memory_space<vmem>>, vector<8x128xf32>
    tpu.vector_store %arg4[%c0_41, %c0_42], %79 {strides = array<i32>} : memref<8x128xf32, #tpu.memory_space<vmem>>, vector<8x128xf32>,
    return
  }
}

</mosaic_0001>

<bundles_post_ra>
// kernel: tpu_custom_call.1
= control target key start
LH: loop header
LB: loop body
LE: loop exit
PB: predicated region body
PF: predicated region fallthrough
CT: control target
= control target key end

     0   :  { %9 = vsyncpa [#allocation3], 0  ;;  %s2154_s0 = inlined_call_operand.hbm [shape: f32[32,44], index: 0, kind: input, shape index: {}]   ;;  %s2155_s1 = inlined_call_operand.hbm [shape: f32[8,10], index: 1, kind: input, shape index: {}]   ;;  %s2156_s2 = inlined_call_operand.hbm [shape: f32[120,128], index: 2, kind: input, shape index: {}]   ;;  %s2157_s3 = inlined_call_operand.hbm [shape: bf16[10,128,128], index: 3, kind: input, shape index: {}]   ;;  %s2158_s4 = inlined_call_operand.hbm [shape: f32[8,128], index: 4, kind: output, shape index: {}]  }
   0x1   :  { %10 = vsyncpa [#allocation6], 0 }
   0x2   :  { %11 = vsyncpa [#allocation9], 0  ;;  %s31_s17 = sshll.u32 %s2155_s1, 4  ;;  %s32_s17 = int_to_ptr.hbm [resolvable:$true] %s31_s17 }
   0x3   :  { %12 = vsyncpa [#allocation4], 0  ;;  %s1927_s18 = smov [#allocation5]   ;;  %s17_s22 = sshll.u32 %s2154_s0, 4  ;;  %s18_s22 = int_to_ptr.hbm [resolvable:$true] %s17_s22 }
   0x4   :  { %s33_s19 = sshll.u32 %s1927_s18, 4  ;;  %s1928_s23 = smov [#allocation2]   ;;  %s34_s19 = int_to_ptr.vmem [resolvable:$true] %s33_s19 }
   0x5   :  { %36 = dma.hbm_to_vmem [thread:$0]  %s32_s17, 128, %s34_s19, [#allocation6]  }
   0x6   :  { %s19_s24 = sshll.u32 %s1928_s23, 4  ;;  %s1929_s25 = smov 128   ;;  %s20_s24 = int_to_ptr.vmem [resolvable:$true] %s19_s24 }
   0x7   :  { %s1930_s26 = smov 8   ;;  %s41_s1 = sshll.u32 %s2156_s2, 4  ;;  %s42_s1 = int_to_ptr.hbm [resolvable:$true] %s41_s1 }
   0x8   :  { %25 = dma.hbm_to_vmem [thread:$0]  %s18_s22, 512, %s20_s24, [#allocation3], %s1929_s25, %s1929_s25, %s1930_s26  }
   0x9   :  { %s1931_s29 = smov [#allocation7]   ;;  %s54_s0 = sshll.u32 %s2157_s3, 4  ;;  %s55_s0 = int_to_ptr.hbm [resolvable:$true] %s54_s0 }
   0xa   :  { %s43_s30 = sshll.u32 %s1931_s29, 4  ;;  %s1932_s7 = smov [#allocation8]   ;;  %s44_s30 = int_to_ptr.vmem [resolvable:$true] %s43_s30 }
   0xb   :  { %49 = dma.hbm_to_vmem [thread:$0]  %s42_s1, 1920, %s44_s30, [#allocation6], %s1929_s25, %s1929_s25, %s1930_s26  }
   0xc   :  { %s56_s8 = sshll.u32 %s1932_s7, 4  ;;  %s1933_s9 = smov 64   ;;  %s57_s8 = int_to_ptr.vmem [resolvable:$true] %s56_s8 }
   0xd   :  { %s1934_s10 = smov 4  }
   0xe   :  { %62 = dma.hbm_to_vmem [thread:$0]  %s55_s0, 10240, %s57_s8, [#allocation9], %s1933_s9, %s1933_s9, %s1934_s10  }
   0xf   :  { %1919 = dma.done.wait [#allocation3], 512  }
  0x10   :  { %1920 = vsyncadd [#allocation3], 4294966784 }
  0x11   :  { %1921 = dma.done.wait [#allocation6], 2048  }
  0x12   :  { %1922 = vsyncadd [#allocation6], 4294965248 }
  0x13   :  { %1923 = dma.done.wait [#allocation9], 10240  }
  0x14   :  { %1924 = vsyncadd [#allocation9], 4294957056  ;;  %vm111_vm0 = vcmask 1043456   ;;  %vm151_vm1 = vcmask 64512   ;;  %v93_v0 = vld [vmem:[#allocation7 + $0x70] sm:$0xf] }
  0x15   :  { %v150_v1 = vld [vmem:[#allocation5] sm:$0xff]  ;;  %v83_v2 = vld [vmem:[#allocation7 + $0x20] sm:$0xff]  ;;  %1316 = vmatpush.msk.msra.mxu0 %vm111_vm0, %v93_v0  ;;  %v92_v3 = vld [vmem:[#allocation7 + $0x68] sm:$0xff]  ;;  %v1935_v9 = vmov 4   ;;  %v1936_v11 = vmov 1   ;;  %v1937_v12 = vmov 0  }
  0x16   :  { %179 = vmatpush.msra.mxu1 %v150_v1  ;;  %v91_v4 = vld [vmem:[#allocation7 + $0x60] sm:$0xff]  ;;  %v90_v5 = vld [vmem:[#allocation7 + $0x58] sm:$0xff]  ;;  %v1653_v6 = vld [vmem:[#allocation8 + $0x38] sm:$0xff]  ;;  %1765 = vset.pattern.permute.xlu1 %v1935_v9  ;;  %vm98_vm2 = vcmask 359424   ;;  %vm1272_vm3 = vcmask 261120   ;;  %s1945_s2 = smov [#allocation10]  }
  0x17   :  { %1321 = vmatmul.msk.f32.vlgmr.msra.gmra.mxu1 %vm151_vm1, %v83_v2  ;;  %126 = vmatpush.msra.mxu0 %v92_v3  ;;  %v1661_v7 = vld [vmem:[#allocation8 + $0x78] sm:$0xff]  ;;  %v84_v13 = vld [vmem:[#allocation7 + $0x28] sm:$0xff]  ;;  %v94_v17 = vld [vmem:[#allocation2] sm:$0xff]  ;;  %s1302_s3 = sshll.u32 %s1945_s2, 4  ;;  %s1304_s13 = sshll.u32 %s2158_s4, 4  ;;  %s1303_s3 = int_to_ptr.vmem [resolvable:$true] %s1302_s3  ;;  %s1305_s13 = int_to_ptr.hbm [resolvable:$true] %s1304_s13 }
  0x18   :  { %v1669_v8 = vld [vmem:[#allocation8 + $0xb8] sm:$0xff]  ;;  %1762 = vset.pattern.permute.xlu2 %v1936_v11  ;;  %1761 = vset.pattern.permute.xlu0 %v1937_v12  ;;  %v1652_v14 = vld [vmem:[#allocation8 + $0x30] sm:$0xff]  ;;  %v95_v22 = vld [vmem:[#allocation2 + $0x8] sm:$0xff] }
  0x19   :  { %127 = vmatpush.msra.mxu0 %v91_v4  ;;  %v89_v10 = vld [vmem:[#allocation7 + $0x50] sm:$0xff]  ;;  %257 = vmatpush.bf16.msra.mxu2 %v1653_v6  ;;  %v88_v15 = vld [vmem:[#allocation7 + $0x48] sm:$0xff]  ;;  %v86_v23 = vld [vmem:[#allocation7 + $0x38] sm:$0xff] }
  0x1a   :  { %365 = vmatpush.bf16.msra.mxu3 %v1661_v7  ;;  %469 = vmatpush.bf16.msrb.mxu1 %v1669_v8  ;;  %v1660_v16 = vld [vmem:[#allocation8 + $0x70] sm:$0xff]  ;;  %v1677_v18 = vld [vmem:[#allocation8 + $0xf8] sm:$0xff]  ;;  %v1651_v26 = vld [vmem:[#allocation8 + $0x28] sm:$0xff]  ;;  %v1938_v7 = vmov 7   ;;  %v1939_v8 = vmov 2  }
  0x1b   :  { %128 = vmatpush.msra.mxu0 %v90_v5  ;;  %v1668_v19 = vld [vmem:[#allocation8 + $0xb0] sm:$0xff]  ;;  %v85_v21 = vld [vmem:[#allocation7 + $0x30] sm:$0xff]  ;;  %v1659_v27 = vld [vmem:[#allocation8 + $0x68] sm:$0xff] }
  0x1c   :  { %v1676_v20 = vld [vmem:[#allocation8 + $0xf0] sm:$0xff]  ;;  %v97_v25 = vld [vmem:[#allocation2 + $0x18] sm:$0xff]  ;;  %v1667_v28 = vld [vmem:[#allocation8 + $0xa8] sm:$0xff] }
  0x1d   :  { %129 = vmatpush.msra.mxu0 %v89_v10  ;;  %258 = vmatpush.bf16.msra.mxu2 %v1652_v14  ;;  %v96_v24 = vld [vmem:[#allocation2 + $0x10] sm:$0xff]  ;;  %v1675_v29 = vld [vmem:[#allocation8 + $0xe8] sm:$0xff]  ;;  %v1650_v30 = vld [vmem:[#allocation8 + $0x20] sm:$0xff] }
  0x1e   :  { %366 = vmatpush.bf16.msra.mxu3 %v1660_v16  ;;  %470 = vmatpush.bf16.msrb.mxu1 %v1668_v19  ;;  %v1658_v31 = vld [vmem:[#allocation8 + $0x60] sm:$0xff]  ;;  %v1649_v34 = vld [vmem:[#allocation8 + $0x18] sm:$0xff]  ;;  %v1648_v38 = vld [vmem:[#allocation8 + $0x10] sm:$0xff] }
  0x1f   :  { %1322 = vmatmul.msk.f32.gmra.mxu1 %vm151_vm1, %v84_v13  ;;  %130 = vmatpush.msra.mxu0 %v88_v15  ;;  %v1666_v32 = vld [vmem:[#allocation8 + $0xa0] sm:$0xff]  ;;  %v1657_v35 = vld [vmem:[#allocation8 + $0x58] sm:$0xff]  ;;  %v1656_v39 = vld [vmem:[#allocation8 + $0x50] sm:$0xff] }
  0x20   :  { %1317 = vmatmul.msk.f32.vlgmr.msra.gmra.mxu0 %vm98_vm2, %v94_v17  ;;  %v1674_v33 = vld [vmem:[#allocation8 + $0xe0] sm:$0xff]  ;;  %v1665_v36 = vld [vmem:[#allocation8 + $0x98] sm:$0xff]  ;;  %v1664_v40 = vld [vmem:[#allocation8 + $0x90] sm:$0xff] }
  0x21   :  { %577 = vmatpush.bf16.msrb.mxu0 %v1677_v18  ;;  %259 = vmatpush.bf16.msra.mxu2 %v1651_v26  ;;  %v1673_v37 = vld [vmem:[#allocation8 + $0xd8] sm:$0xff]  ;;  %v1672_v41 = vld [vmem:[#allocation8 + $0xd0] sm:$0xff]  ;;  %v1647_v42 = vld [vmem:[#allocation8 + $0x8] sm:$0xff] }
  0x22   :  { %367 = vmatpush.bf16.msra.mxu3 %v1659_v27  ;;  %471 = vmatpush.bf16.msrb.mxu1 %v1667_v28  ;;  %v1655_v43 = vld [vmem:[#allocation8 + $0x48] sm:$0xff]  ;;  %v1646_v46 = vld [vmem:[#allocation8] sm:$0xff]  ;;  %v1685_v50 = vld [vmem:[#allocation8 + $0x138] sm:$0xff] }
  0x23   :  { %v1663_v44 = vld [vmem:[#allocation8 + $0x88] sm:$0xff]  ;;  %v1654_v47 = vld [vmem:[#allocation8 + $0x40] sm:$0xff]  ;;  %v1693_v51 = vld [vmem:[#allocation8 + $0x178] sm:$0xff] }
  0x24   :  { %v1671_v45 = vld [vmem:[#allocation8 + $0xc8] sm:$0xff]  ;;  %v1662_v48 = vld [vmem:[#allocation8 + $0x80] sm:$0xff]  ;;  %v1701_v52 = vld [vmem:[#allocation8 + $0x1b8] sm:$0xff] }
  0x25   :  { %578 = vmatpush.bf16.msrb.mxu0 %v1676_v20  ;;  %260 = vmatpush.bf16.msra.mxu2 %v1650_v30  ;;  %v1670_v49 = vld [vmem:[#allocation8 + $0xc0] sm:$0xff]  ;;  %v1709_v53 = vld [vmem:[#allocation8 + $0x1f8] sm:$0xff]  ;;  %v1684_v54 = vld [vmem:[#allocation8 + $0x130] sm:$0xff] }
  0x26   :  { %368 = vmatpush.bf16.msra.mxu3 %v1658_v31  ;;  %472 = vmatpush.bf16.msrb.mxu1 %v1666_v32  ;;  %v1692_v55 = vld [vmem:[#allocation8 + $0x170] sm:$0xff]  ;;  %v1683_v58 = vld [vmem:[#allocation8 + $0x128] sm:$0xff]  ;;  %v1682_v63 = vld [vmem:[#allocation8 + $0x120] sm:$0xff] }
  0x27   :  { %1323 = vmatmul.msk.f32.gmra.mxu1 %vm151_vm1, %v85_v21  ;;  %v1700_v56 = vld [vmem:[#allocation8 + $0x1b0] sm:$0xff]  ;;  %v1691_v59 = vld [vmem:[#allocation8 + $0x168] sm:$0xff]  ;;  %v1690_v0 = vld [vmem:[#allocation8 + $0x160] sm:$0xff] }
  0x28   :  { %1318 = vmatmul.msk.f32.gmra.mxu0 %vm98_vm2, %v95_v22  ;;  %v1708_v57 = vld [vmem:[#allocation8 + $0x1f0] sm:$0xff]  ;;  %v1699_v60 = vld [vmem:[#allocation8 + $0x1a8] sm:$0xff]  ;;  %v1698_v1 = vld [vmem:[#allocation8 + $0x1a0] sm:$0xff] }
  0x29   :  { %579 = vmatpush.bf16.msrb.mxu0 %v1675_v29  ;;  %261 = vmatpush.bf16.msra.mxu2 %v1649_v34  ;;  %v1707_v62 = vld [vmem:[#allocation8 + $0x1e8] sm:$0xff]  ;;  %v1706_v2 = vld [vmem:[#allocation8 + $0x1e0] sm:$0xff]  ;;  %v1681_v4 = vld [vmem:[#allocation8 + $0x118] sm:$0xff] }
  0x2a   :  { %369 = vmatpush.bf16.msra.mxu3 %v1657_v35  ;;  %473 = vmatpush.bf16.msrb.mxu1 %v1665_v36  ;;  %v1689_v5 = vld [vmem:[#allocation8 + $0x158] sm:$0xff]  ;;  %v1680_v14 = vld [vmem:[#allocation8 + $0x110] sm:$0xff]  ;;  %v79_v18 = vld [vmem:[#allocation7] sm:$0xff] }
  0x2b   :  { %v1697_v6 = vld [vmem:[#allocation8 + $0x198] sm:$0xff]  ;;  %v1688_v15 = vld [vmem:[#allocation8 + $0x150] sm:$0xff]  ;;  %v1679_v21 = vld [vmem:[#allocation8 + $0x108] sm:$0xff] }
  0x2c   :  { %v1705_v10 = vld [vmem:[#allocation8 + $0x1d8] sm:$0xff]  ;;  %v1696_v16 = vld [vmem:[#allocation8 + $0x190] sm:$0xff]  ;;  %v1687_v22 = vld [vmem:[#allocation8 + $0x148] sm:$0xff] }
  0x2d   :  { %580 = vmatpush.bf16.msrb.mxu0 %v1674_v33  ;;  %262 = vmatpush.bf16.msra.mxu2 %v1648_v38  ;;  %v1704_v17 = vld [vmem:[#allocation8 + $0x1d0] sm:$0xff]  ;;  %v1703_v26 = vld [vmem:[#allocation8 + $0x1c8] sm:$0xff]  ;;  %v1678_v29 = vld [vmem:[#allocation8 + $0x100] sm:$0xff] }
  0x2e   :  { %370 = vmatpush.bf16.msra.mxu3 %v1656_v39  ;;  %474 = vmatpush.bf16.msrb.mxu1 %v1664_v40  ;;  %v80_v19 = vld [vmem:[#allocation7 + $0x8] sm:$0xff]  ;;  %v1686_v30 = vld [vmem:[#allocation8 + $0x140] sm:$0xff]  ;;  %v1717_v35 = vld [vmem:[#allocation8 + $0x238] sm:$0xff] }
  0x2f   :  { %1324 = vmatmul.msk.f32.gmra.mxu1 %vm151_vm1, %v86_v23  ;;  %v1940_v23 = vmov 3   ;;  %v1694_v31 = vld [vmem:[#allocation8 + $0x180] sm:$0xff]  ;;  %v1725_v36 = vld [vmem:[#allocation8 + $0x278] sm:$0xff]  ;;  %v1716_v39 = vld [vmem:[#allocation8 + $0x230] sm:$0xff] }
  0x30   :  { %1319 = vmatmul.msk.f32.gmra.mxu0 %vm98_vm2, %v96_v24  ;;  %v1702_v32 = vld [vmem:[#allocation8 + $0x1c0] sm:$0xff]  ;;  %v81_v38 = vld [vmem:[#allocation7 + $0x10] sm:$0xff]  ;;  %v1724_v40 = vld [vmem:[#allocation8 + $0x270] sm:$0xff] }
  0x31   :  { %581 = vmatpush.bf16.msrb.mxu0 %v1673_v37  ;;  %263 = vmatpush.bf16.msra.mxu2 %v1647_v42  ;;  %v1941_v37 = vmov 5  }
  0x32   :  { %371 = vmatpush.bf16.msra.mxu3 %v1655_v43  ;;  %475 = vmatpush.bf16.msrb.mxu1 %v1663_v44 }
  0x35   :  { %582 = vmatpush.bf16.msrb.mxu0 %v1672_v41  ;;  %264 = vmatpush.bf16.msra.mxu2 %v1646_v46  ;;  %v82_v41 = vld [vmem:[#allocation7 + $0x18] sm:$0xff]  ;;  %v1942_v46 = vmov 6  }
  0x36   :  { %372 = vmatpush.bf16.msra.mxu3 %v1654_v47  ;;  %476 = vmatpush.bf16.msrb.mxu1 %v1662_v48  ;;  %v1715_v47 = vld [vmem:[#allocation8 + $0x228] sm:$0xff] }
  0x37   :  { %v1723_v48 = vld [vmem:[#allocation8 + $0x268] sm:$0xff] }
  0x38   :  { %1320 = vmatmul.msk.f32.gmra.mxu0 %vm98_vm2, %v97_v25  ;;  %v1695_v25 = vld [vmem:[#allocation8 + $0x188] sm:$0xff] }
  0x39   :  { %583 = vmatpush.bf16.msrb.mxu0 %v1671_v45  ;;  %685 = vmatpush.bf16.msrb.mxu2 %v1685_v50  ;;  %v1943_v50 = vmov 8  }
  0x3a   :  { %793 = vmatpush.bf16.msrb.mxu3 %v1693_v51  ;;  %901 = vmatpush.bf16.msra.mxu1 %v1701_v52  ;;  %v1722_v51 = vld [vmem:[#allocation8 + $0x260] sm:$0xff]  ;;  %v1713_v52 = vld [vmem:[#allocation8 + $0x218] sm:$0xff] }
  0x3d   :  { %584 = vmatpush.bf16.msrb.mxu0 %v1670_v49  ;;  %686 = vmatpush.bf16.msrb.mxu2 %v1684_v54  ;;  %v1714_v49 = vld [vmem:[#allocation8 + $0x220] sm:$0xff]  ;;  %v1712_v54 = vld [vmem:[#allocation8 + $0x210] sm:$0xff] }
  0x3e   :  { %794 = vmatpush.bf16.msrb.mxu3 %v1692_v55  ;;  %902 = vmatpush.bf16.msra.mxu1 %v1700_v56  ;;  %v1720_v56 = vld [vmem:[#allocation8 + $0x250] sm:$0xff] }
  0x41   :  { %1009 = vmatpush.bf16.msra.mxu0 %v1709_v53  ;;  %687 = vmatpush.bf16.msrb.mxu2 %v1683_v58  ;;  %v1721_v53 = vld [vmem:[#allocation8 + $0x258] sm:$0xff]  ;;  %v1719_v58 = vld [vmem:[#allocation8 + $0x248] sm:$0xff] }
  0x42   :  { %795 = vmatpush.bf16.msrb.mxu3 %v1691_v59  ;;  %903 = vmatpush.bf16.msra.mxu1 %v1699_v60  ;;  %v1710_v59 = vld [vmem:[#allocation8 + $0x200] sm:$0xff] }
  0x43   :  { %v1718_v60 = vld [vmem:[#allocation8 + $0x240] sm:$0xff] }
  0x45   :  { %1010 = vmatpush.bf16.msra.mxu0 %v1708_v57  ;;  %688 = vmatpush.bf16.msrb.mxu2 %v1682_v63  ;;  %v1711_v57 = vld [vmem:[#allocation8 + $0x208] sm:$0xff] }
  0x46   :  { %796 = vmatpush.bf16.msrb.mxu3 %v1690_v0  ;;  %904 = vmatpush.bf16.msra.mxu1 %v1698_v1 }
  0x49   :  { %1011 = vmatpush.bf16.msra.mxu0 %v1707_v62  ;;  %689 = vmatpush.bf16.msrb.mxu2 %v1681_v4  ;;  %v1944_v62 = vmov 9  }
  0x4a   :  { %797 = vmatpush.bf16.msrb.mxu3 %v1689_v5  ;;  %905 = vmatpush.bf16.msra.mxu1 %v1697_v6 }
  0x4d   :  { %1012 = vmatpush.bf16.msra.mxu0 %v1706_v2  ;;  %690 = vmatpush.bf16.msrb.mxu2 %v1680_v14 }
  0x4e   :  { %798 = vmatpush.bf16.msrb.mxu3 %v1688_v15  ;;  %906 = vmatpush.bf16.msra.mxu1 %v1696_v16 }
  0x51   :  { %1013 = vmatpush.bf16.msra.mxu0 %v1705_v10  ;;  %691 = vmatpush.bf16.msrb.mxu2 %v1679_v21 }
  0x52   :  { %799 = vmatpush.bf16.msrb.mxu3 %v1687_v22  ;;  %907 = vmatpush.bf16.msra.mxu1 %v1695_v25 }
  0x55   :  { %1014 = vmatpush.bf16.msra.mxu0 %v1704_v17  ;;  %692 = vmatpush.bf16.msrb.mxu2 %v1678_v29 }
  0x56   :  { %800 = vmatpush.bf16.msrb.mxu3 %v1686_v30  ;;  %908 = vmatpush.bf16.msra.mxu1 %v1694_v31 }
  0x59   :  { %1015 = vmatpush.bf16.msra.mxu0 %v1703_v26 }
  0x5d   :  { %1016 = vmatpush.bf16.msra.mxu0 %v1702_v32 }
  0x94   :  { %v1994_v61 = vpop.f32.mrf.mxu1 }
  0x95   :  { %705 = vperm.xlu1 %1765, %v1994_v61   ;;  %385 = vperm.xlu2 %1762, %v1994_v61  }
  0x96   :  { %278 = vperm.xlu0 %1761, %v1994_v61  }
  0x9c   :  { %v1999_v3 = vpop.f32.mrf.mxu1 }
  0x9d   :  { %1768 = vset.pattern.permute.xlu1 %v1938_v7  ;;  %1763 = vset.pattern.permute.xlu2 %v1939_v8  ;;  %v132_v13 = vpop.f32.mrf.mxu0 }
  0x9e   :  { %283 = vperm.xlu0 %1761, %v1999_v3   ;;  %1029 = vperm.xlu1 %1768, %v1994_v61   ;;  %v144_v20 = vmul.f32 %v132_v13, %v79_v18 }
  0x9f   :  { %489 = vperm.xlu2 %1763, %v1994_v61  }
  0xa4   :  { %v2018_v34 = vpop.f32.mrf.mxu1 }
  0xa5   :  { %v135_v24 = vpop.f32.mrf.mxu0 }
  0xa6   :  { %1771 = vset.pattern.permute.xlu0 %v1940_v23  ;;  %1770 = vset.pattern.permute.xlu1 %v1939_v8  ;;  %v145_v27 = vmul.f32 %v135_v24, %v80_v19 }
  0xa7   :  { %1764 = vset.pattern.permute.xlu2 %v1940_v23  ;;  %601 = vperm.xlu0 %1771, %v1999_v3  }
  0xa8   :  { %597 = vperm.xlu2 %1764, %v1994_v61   ;;  %493 = vperm.xlu1 %1770, %v1999_v3   ;;  %v2012_v28 = vpack.c.bf16 %v145_v27, %v144_v20 }
  0xaa   :  { %265 = vmatmul.bf16.vlgmr.msra.gmra.mxu2 %v2012_v28  ;;  %373 = vmatmul.bf16.vlgmr.msra.gmra.mxu3 %v2012_v28 }
  0xab   :  { %477 = vmatmul.bf16.vlgmr.msrb.gmra.mxu1 %v2012_v28  ;;  %585 = vmatmul.bf16.vlgmr.msrb.gmra.mxu0 %v2012_v28 }
  0xac   :  { %1117 = vmatpush.bf16.msrb.mxu1 %v1717_v35  ;;  %1726 = vmatpush.bf16.msra.mxu2 %v1717_v35  ;;  %v2041_v55 = vpop.f32.mrf.mxu1 }
  0xad   :  { %v138_v33 = vpop.f32.mrf.mxu0  ;;  %1225 = vmatpush.bf16.msrb.mxu0 %v1725_v36  ;;  %1734 = vmatpush.bf16.msra.mxu3 %v1725_v36 }
  0xae   :  { %v146_v42 = vmul.f32 %v138_v33, %v81_v38 }
  0xaf   :  { %1778 = vset.pattern.permute.xlu0 %v1936_v11 }
  0xb0   :  { %1766 = vset.pattern.permute.xlu2 %v1941_v37  ;;  %1772 = vset.pattern.permute.xlu1 %v1935_v9 }
  0xb1   :  { %393 = vperm.xlu0 %1778, %v2018_v34   ;;  %813 = vperm.xlu2 %1766, %v1994_v61  }
  0xb2   :  { %709 = vperm.xlu1 %1772, %v1999_v3   ;;  %1118 = vmatpush.bf16.msrb.mxu1 %v1716_v39 }
  0xb3   :  { %1727 = vmatpush.bf16.msra.mxu2 %v1716_v39  ;;  %1226 = vmatpush.bf16.msrb.mxu0 %v1724_v40 }
  0xb4   :  { %1735 = vmatpush.bf16.msra.mxu3 %v1724_v40 }
  0xb5   :  { %v141_v43 = vpop.f32.mrf.mxu0 }
  0xb6   :  { %v147_v44 = vmul.f32 %v141_v43, %v82_v41  ;;  %1119 = vmatpush.bf16.msrb.mxu1 %v1715_v47 }
  0xb7   :  { %1728 = vmatpush.bf16.msra.mxu2 %v1715_v47  ;;  %1227 = vmatpush.bf16.msrb.mxu0 %v1723_v48 }
  0xb8   :  { %v2026_v45 = vpack.c.bf16 %v147_v44, %v146_v42  ;;  %1736 = vmatpush.bf16.msra.mxu3 %v1723_v48 }
  0xb9   :  { %1783 = vset.pattern.permute.xlu0 %v1942_v46  ;;  %1767 = vset.pattern.permute.xlu2 %v1942_v46 }
  0xba   :  { %1774 = vset.pattern.permute.xlu1 %v1942_v46  ;;  %929 = vperm.xlu0 %1783, %v2018_v34  }
  0xbb   :  { %921 = vperm.xlu2 %1767, %v1994_v61   ;;  %925 = vperm.xlu1 %1774, %v1999_v3  }
  0xbc   :  { %270 = vmatmul.bf16.gmra.mxu2 %v2026_v45  ;;  %378 = vmatmul.bf16.gmra.mxu3 %v2026_v45 }
  0xbd   :  { %482 = vmatmul.bf16.gmra.mxu1 %v2026_v45  ;;  %590 = vmatmul.bf16.gmra.mxu0 %v2026_v45 }
  0xbe   :  { %1120 = vmatpush.bf16.msrb.mxu1 %v1714_v49  ;;  %1729 = vmatpush.bf16.msra.mxu2 %v1714_v49 }
  0xbf   :  { %1228 = vmatpush.bf16.msrb.mxu0 %v1722_v51  ;;  %1737 = vmatpush.bf16.msra.mxu3 %v1722_v51 }
  0xc2   :  { %1785 = vset.pattern.permute.xlu0 %v1943_v50  ;;  %1121 = vmatpush.bf16.msrb.mxu1 %v1713_v52 }
  0xc3   :  { %1769 = vset.pattern.permute.xlu2 %v1936_v11  ;;  %1777 = vset.pattern.permute.xlu1 %v1937_v12 }
  0xc4   :  { %1145 = vperm.xlu0 %1785, %v2018_v34   ;;  %389 = vperm.xlu2 %1769, %v1999_v3  }
  0xc5   :  { %288 = vperm.xlu1 %1777, %v2018_v34   ;;  %1730 = vmatpush.bf16.msra.mxu2 %v1713_v52 }
  0xc6   :  { %1229 = vmatpush.bf16.msrb.mxu0 %v1721_v53  ;;  %1738 = vmatpush.bf16.msra.mxu3 %v1721_v53 }
  0xc7   :  { %1122 = vmatpush.bf16.msrb.mxu1 %v1712_v54 }
  0xc9   :  { %1731 = vmatpush.bf16.msra.mxu2 %v1712_v54 }
  0xca   :  { %1230 = vmatpush.bf16.msrb.mxu0 %v1720_v56  ;;  %1739 = vmatpush.bf16.msra.mxu3 %v1720_v56 }
  0xcb   :  { %1123 = vmatpush.bf16.msrb.mxu1 %v1711_v57 }
  0xcc   :  { %1790 = vset.pattern.permute.xlu0 %v1940_v23  ;;  %1773 = vset.pattern.permute.xlu2 %v1941_v37 }
  0xcd   :  { %1779 = vset.pattern.permute.xlu1 %v1939_v8  ;;  %609 = vperm.xlu0 %1790, %v2041_v55  }
  0xce   :  { %817 = vperm.xlu2 %1773, %v1999_v3   ;;  %497 = vperm.xlu1 %1779, %v2018_v34  }
  0xcf   :  { %693 = vmatmul.bf16.vlgmr.msrb.gmra.mxu2 %v2012_v28  ;;  %801 = vmatmul.bf16.vlgmr.msrb.gmra.mxu3 %v2012_v28 }
  0xd0   :  { %909 = vmatmul.bf16.vlgmr.msra.gmra.mxu1 %v2012_v28  ;;  %1017 = vmatmul.bf16.vlgmr.msra.gmra.mxu0 %v2012_v28 }
  0xd1   :  { %1732 = vmatpush.bf16.msra.mxu2 %v1711_v57  ;;  %1231 = vmatpush.bf16.msrb.mxu0 %v1719_v58 }
  0xd2   :  { %1740 = vmatpush.bf16.msra.mxu3 %v1719_v58  ;;  %1124 = vmatpush.bf16.msrb.mxu1 %v1710_v59 }
  0xd5   :  { %1793 = vset.pattern.permute.xlu0 %v1942_v46  ;;  %1733 = vmatpush.bf16.msra.mxu2 %v1710_v59 }
  0xd6   :  { %1775 = vset.pattern.permute.xlu2 %v1938_v7  ;;  %1781 = vset.pattern.permute.xlu1 %v1935_v9 }
  0xd7   :  { %933 = vperm.xlu0 %1793, %v2041_v55   ;;  %1033 = vperm.xlu2 %1775, %v1999_v3  }
  0xd8   :  { %713 = vperm.xlu1 %1781, %v2018_v34   ;;  %1232 = vmatpush.bf16.msrb.mxu0 %v1718_v60 }
  0xd9   :  { %1741 = vmatpush.bf16.msra.mxu3 %v1718_v60 }
  0xdf   :  { %1796 = vset.pattern.permute.xlu0 %v1944_v62  ;;  %698 = vmatmul.bf16.gmra.mxu2 %v2026_v45 }
  0xe0   :  { %806 = vmatmul.bf16.gmra.mxu3 %v2026_v45  ;;  %914 = vmatmul.bf16.gmra.mxu1 %v2026_v45 }
  0xe1   :  { %1022 = vmatmul.bf16.gmra.mxu0 %v2026_v45  ;;  %1776 = vset.pattern.permute.xlu2 %v1943_v50 }
  0xe2   :  { %1784 = vset.pattern.permute.xlu1 %v1938_v7  ;;  %1257 = vperm.xlu0 %1796, %v2041_v55  }
  0xe3   :  { %1141 = vperm.xlu2 %1776, %v1999_v3   ;;  %1037 = vperm.xlu1 %1784, %v2018_v34  }
  0xea   :  { %1249 = vperm.xlu0 %1796, %v1999_v3  }
  0xeb   :  { %1780 = vset.pattern.permute.xlu2 %v1940_v23  ;;  %1786 = vset.pattern.permute.xlu1 %v1944_v62 }
  0xec   :  { %605 = vperm.xlu2 %1780, %v2018_v34   ;;  %1253 = vperm.xlu1 %1786, %v2018_v34  }
  0xef   :  { %1130 = vmatmul.bf16.vlgmr.msra.gmra.mxu2 %v2026_v45  ;;  %v386_v63 = vpop.permute.xlu2 %385 }
  0xf0   :  { %1125 = vmatmul.bf16.vlgmr.msrb.gmra.mxu1 %v2012_v28  ;;  %1238 = vmatmul.bf16.vlgmr.msra.gmra.mxu3 %v2026_v45 }
  0xf1   :  { %1233 = vmatmul.bf16.vlgmr.msrb.gmra.mxu0 %v2012_v28 }
  0xf4   :  { %1782 = vset.pattern.permute.xlu2 %v1941_v37  ;;  %1787 = vset.pattern.permute.xlu1 %v1937_v12 }
  0xf5   :  { %821 = vperm.xlu2 %1782, %v2018_v34   ;;  %293 = vperm.xlu1 %1787, %v2041_v55  }
  0xf9   :  { %v490_v0 = vpop.permute.xlu2 %489 }
  0xfd   :  { %1789 = vset.pattern.permute.xlu2 %v1939_v8  ;;  %1788 = vset.pattern.permute.xlu1 %v1936_v11 }
  0xfe   :  { %501 = vperm.xlu2 %1789, %v2041_v55   ;;  %397 = vperm.xlu1 %1788, %v2041_v55  }
 0x102   :  { %v598_v1 = vpop.permute.xlu2 %597 }
 0x106   :  { %1792 = vset.pattern.permute.xlu2 %v1941_v37  ;;  %1791 = vset.pattern.permute.xlu1 %v1935_v9 }
 0x107   :  { %825 = vperm.xlu2 %1792, %v2041_v55   ;;  %717 = vperm.xlu1 %1791, %v2041_v55   ;;  %v706_v12 = vpop.permute.xlu1 %705 }
 0x108   :  { %v279_v13 = vpop.permute.xlu0 %278 }
 0x10b   :  { %v814_v2 = vpop.permute.xlu2 %813 }
 0x10f   :  { %1795 = vset.pattern.permute.xlu2 %v1943_v50  ;;  %1794 = vset.pattern.permute.xlu1 %v1938_v7 }
 0x110   :  { %1149 = vperm.xlu2 %1795, %v2041_v55   ;;  %1041 = vperm.xlu1 %1794, %v2041_v55   ;;  %v1030_v11 = vpop.permute.xlu1 %1029  ;;  %v284_v26 = vpop.permute.xlu0 %283 }
 0x115   :  { %v922_v3 = vpop.permute.xlu2 %921 }
 0x118   :  { %1798 = vset.pattern.permute.xlu2 %v1944_v62  ;;  %1797 = vset.pattern.permute.xlu1 %v1943_v50 }
 0x119   :  { %1245 = vperm.xlu2 %1798, %v1994_v61   ;;  %1137 = vperm.xlu1 %1797, %v1994_v61   ;;  %v2112_v33 = vpop.permute.xlu0 %601 }
 0x11a   :  { %v494_v9 = vpop.permute.xlu1 %493 }
 0x11e   :  { %v2094_v10 = vpop.permute.xlu2 %389 }
 0x123   :  { %v394_v38 = vpop.permute.xlu0 %393 }
 0x124   :  { %v710_v4 = vpop.permute.xlu1 %709 }
 0x128   :  { %v478_v5 = vpop.f32.mrf.mxu1  ;;  %v586_v6 = vpop.f32.mrf.mxu0 }
 0x129   :  { %v504_v8 = vmul.f32 %v490_v0, %v478_v5  ;;  %v612_v7 = vmul.f32 %v598_v1, %v586_v6  ;;  %v2098_v61 = vpop.permute.xlu2 %817 }
 0x12c   :  { %v2118_v47 = vpop.permute.xlu0 %929 }
 0x12d   :  { %v926_v14 = vpop.permute.xlu1 %925  ;;  %v266_v15 = vpop.f32.mrf.mxu2 }
 0x12e   :  { %v374_v16 = vpop.f32.mrf.mxu3  ;;  %v296_v17 = vmul.f32 %v279_v13, %v266_v15 }
 0x12f   :  { %v400_v18 = vmul.f32 %v386_v63, %v374_v16 }
 0x130   :  { %v508_v19 = vadd.f32 %v504_v8, %v296_v17  ;;  %v480_v21 = vpop.f32.mrf.mxu1  ;;  %v2096_v22 = vpop.f32.mrf.mxu0 }
 0x131   :  { %v616_v20 = vadd.f32 %v612_v7, %v400_v18  ;;  %v2110_v31 = vpop.permute.xlu2 %1033  ;;  %v505_v57 = vmul.f32 %v494_v9, %v480_v21 }
 0x135   :  { %v268_v23 = vpop.f32.mrf.mxu2 }
 0x136   :  { %v2102_v25 = vpop.f32.mrf.mxu3  ;;  %v297_v54 = vmul.f32 %v284_v26, %v268_v23 }
 0x137   :  { %v2100_v24 = vpop.permute.xlu1 %288 }
 0x138   :  { %v509_v63 = vadd.f32 %v505_v57, %v297_v54 }
 0x13a   :  { %v2104_v27 = vpop.f32.mrf.mxu1  ;;  %v2106_v28 = vpop.f32.mrf.mxu0 }
 0x13d   :  { %v2116_v39 = vpop.permute.xlu2 %1141 }
 0x13f   :  { %v271_v29 = vpop.f32.mrf.mxu2  ;;  %v2108_v30 = vpop.f32.mrf.mxu3 }
 0x140   :  { %v498_v32 = vpop.permute.xlu1 %497 }
 0x142   :  { %v485_v34 = vpop.f32.mrf.mxu1  ;;  %v2114_v35 = vpop.f32.mrf.mxu0 }
 0x146   :  { %v606_v48 = vpop.permute.xlu2 %605 }
 0x147   :  { %v273_v36 = vpop.f32.mrf.mxu2  ;;  %v381_v37 = vpop.f32.mrf.mxu3 }
 0x14a   :  { %v714_v40 = vpop.permute.xlu1 %713 }
 0x14d   :  { %v910_v41 = vpop.f32.mrf.mxu1  ;;  %v1018_v42 = vpop.f32.mrf.mxu0 }
 0x14e   :  { %v936_v49 = vmul.f32 %v922_v3, %v910_v41  ;;  %v1044_v50 = vmul.f32 %v1030_v11, %v1018_v42  ;;  %v1146_v11 = vpop.permute.xlu0 %1145 }
 0x14f   :  { %v822_v3 = vpop.permute.xlu2 %821 }
 0x152   :  { %v694_v43 = vpop.f32.mrf.mxu2  ;;  %v802_v44 = vpop.f32.mrf.mxu3 }
 0x153   :  { %v720_v45 = vmul.f32 %v706_v12, %v694_v43  ;;  %v828_v46 = vmul.f32 %v814_v2, %v802_v44 }
 0x155   :  { %v724_v51 = vadd.f32 %v720_v45, %v508_v19  ;;  %v832_v52 = vadd.f32 %v828_v46, %v616_v20  ;;  %v2120_v53 = vpop.permute.xlu1 %1037  ;;  %v912_v58 = vpop.f32.mrf.mxu1  ;;  %v506_v45 = vmul.f32 %v498_v32, %v2104_v27  ;;  %v298_v46 = vmul.f32 %v2100_v24, %v271_v29 }
 0x156   :  { %v2126_v59 = vpop.f32.mrf.mxu0  ;;  %v937_v12 = vmul.f32 %v926_v14, %v912_v58  ;;  %v610_v15 = vpop.permute.xlu0 %609  ;;  %v402_v58 = vmul.f32 %v394_v38, %v2108_v30 }
 0x157   :  { %v2122_v55 = vadd.f32 %v1044_v50, %v832_v52  ;;  %v2124_v56 = vadd.f32 %v936_v49, %v724_v51  ;;  %v614_v49 = vmul.f32 %v606_v48, %v2106_v28  ;;  %v401_v51 = vmul.f32 %v2094_v10, %v2102_v25 }
 0x158   :  { %v502_v16 = vpop.permute.xlu2 %501  ;;  %v615_v27 = vmul.f32 %v610_v15, %v2114_v35  ;;  %v510_v32 = vadd.f32 %v506_v45, %v298_v46 }
 0x159   :  { %v507_v52 = vmul.f32 %v502_v16, %v485_v34  ;;  %v618_v48 = vadd.f32 %v614_v49, %v402_v58 }
 0x15a   :  { %v696_v60 = vpop.f32.mrf.mxu2  ;;  %v804_v62 = vpop.f32.mrf.mxu3 }
 0x15b   :  { %v721_v0 = vmul.f32 %v710_v4, %v696_v60  ;;  %v829_v24 = vmul.f32 %v2098_v61, %v804_v62 }
 0x15d   :  { %v725_v1 = vadd.f32 %v721_v0, %v509_v63  ;;  %v915_v8 = vpop.f32.mrf.mxu1 }
 0x15e   :  { %v1254_v2 = vpop.permute.xlu1 %1253  ;;  %v1023_v7 = vpop.f32.mrf.mxu0 }
 0x15f   :  { %v2128_v5 = vadd.f32 %v937_v12, %v725_v1  ;;  %v934_v21 = vpop.permute.xlu0 %933 }
 0x161   :  { %v826_v14 = vpop.permute.xlu2 %825 }
 0x162   :  { %v699_v6 = vpop.f32.mrf.mxu2 }
 0x163   :  { %v807_v13 = vpop.f32.mrf.mxu3  ;;  %v722_v60 = vmul.f32 %v714_v40, %v699_v6 }
 0x164   :  { %v830_v63 = vmul.f32 %v822_v3, %v807_v13 }
 0x165   :  { %v917_v18 = vpop.f32.mrf.mxu1  ;;  %v726_v34 = vadd.f32 %v722_v60, %v510_v32 }
 0x166   :  { %v1025_v19 = vpop.f32.mrf.mxu0  ;;  %v939_v38 = vmul.f32 %v934_v21, %v917_v18 }
 0x167   :  { %v294_v9 = vpop.permute.xlu1 %293  ;;  %v1258_v50 = vpop.permute.xlu0 %1257 }
 0x168   :  { %v299_v43 = vmul.f32 %v294_v9, %v273_v36  ;;  %v613_v36 = vmul.f32 %v2112_v33, %v2096_v22  ;;  %v938_v22 = vmul.f32 %v2118_v47, %v915_v8  ;;  %v1046_v33 = vmul.f32 %v2120_v53, %v1023_v7 }
 0x16a   :  { %v701_v17 = vpop.f32.mrf.mxu2  ;;  %v511_v29 = vadd.f32 %v507_v52, %v299_v43  ;;  %v1150_v28 = vpop.permute.xlu2 %1149  ;;  %v617_v0 = vadd.f32 %v613_v36, %v401_v51  ;;  %v942_v18 = vadd.f32 %v938_v22, %v726_v34  ;;  %v87_v52 = vld [vmem:[#allocation7 + $0x40] sm:$0xff] }
 0x16b   :  { %v809_v20 = vpop.f32.mrf.mxu3 }
 0x16c   :  { %v833_v30 = vadd.f32 %v829_v24, %v617_v0  ;;  %v831_v40 = vmul.f32 %v826_v14, %v809_v20 }
 0x16d   :  { %v2130_v26 = vpop.f32.mrf.mxu1 }
 0x16e   :  { %v1234_v41 = vpop.f32.mrf.mxu0 }
 0x170   :  { %v398_v4 = vpop.permute.xlu1 %397 }
 0x171   :  { %v403_v54 = vmul.f32 %v398_v4, %v381_v37  ;;  %v834_v37 = vadd.f32 %v830_v63, %v618_v48  ;;  %v1250_v4 = vpop.permute.xlu0 %1249 }
 0x172   :  { %v1131_v23 = vpop.f32.mrf.mxu2 }
 0x173   :  { %v1239_v42 = vpop.f32.mrf.mxu3  ;;  %v619_v10 = vadd.f32 %v615_v27, %v403_v54  ;;  %v1154_v61 = vmul.f32 %v1146_v11, %v1131_v23  ;;  %v1050_v20 = vadd.f32 %v1046_v33, %v834_v37  ;;  %v1246_v11 = vpop.permute.xlu2 %1245 }
 0x174   :  { %v1262_v35 = vmul.f32 %v1254_v2, %v1239_v42  ;;  %v1260_v45 = vmul.f32 %v1246_v11, %v1234_v41 }
 0x175   :  { %v1128_v1 = vpop.f32.mrf.mxu1  ;;  %v835_v9 = vadd.f32 %v831_v40, %v619_v10  ;;  %v1158_v2 = vadd.f32 %v1154_v61, %v942_v18 }
 0x176   :  { %v1236_v3 = vpop.f32.mrf.mxu0  ;;  %v1153_v21 = vmul.f32 %v2116_v39, %v1128_v1  ;;  %v1266_v7 = vadd.f32 %v1262_v35, %v1050_v20  ;;  %v1264_v49 = vadd.f32 %v1260_v45, %v2122_v55 }
 0x177   :  { %v1261_v14 = vmul.f32 %v1250_v4, %v1236_v3 }
 0x178   :  { %v1157_v43 = vadd.f32 %v1153_v21, %v2128_v5 }
 0x179   :  { %v718_v44 = vpop.permute.xlu1 %717 }
 0x17a   :  { %v723_v57 = vmul.f32 %v718_v44, %v701_v17  ;;  %v1133_v12 = vpop.f32.mrf.mxu2  ;;  %v1045_v17 = vmul.f32 %v2110_v31, %v2126_v59  ;;  %v1270_v59 = vadd.f32 %v1266_v7, %v1158_v2 }
 0x17b   :  { %v1241_v62 = vpop.f32.mrf.mxu3  ;;  %v1155_v15 = vmul.f32 %v1150_v28, %v1133_v12 }
 0x17c   :  { %v727_v25 = vadd.f32 %v723_v57, %v511_v29  ;;  %v1263_v47 = vmul.f32 %v1258_v50, %v1241_v62  ;;  %v1049_v53 = vadd.f32 %v1045_v17, %v833_v30 }
 0x17e   :  { %v943_v13 = vadd.f32 %v939_v38, %v727_v25 }
 0x180   :  { %v1159_v23 = vadd.f32 %v1155_v15, %v943_v13 }
 0x182   :  { %v1042_v6 = vpop.permute.xlu1 %1041 }
 0x183   :  { %v1047_v16 = vmul.f32 %v1042_v6, %v1025_v19  ;;  %v1265_v19 = vadd.f32 %v1261_v14, %v1049_v53 }
 0x185   :  { %v1051_v8 = vadd.f32 %v1047_v16, %v835_v9  ;;  %v1269_v39 = vadd.f32 %v1265_v19, %v1157_v43 }
 0x187   :  { %v1267_v42 = vadd.f32 %v1263_v47, %v1051_v8 }
 0x189   :  { %v1271_v44 = vadd.f32 %v1267_v42, %v1159_v23 }
 0x18b   :  { %v1138_v31 = vpop.permute.xlu1 %1137  ;;  %1288 = vmatpush.msra.mxu1 %v1271_v44 }
 0x18c   :  { %v1152_v46 = vmul.f32 %v1138_v31, %v2130_v26 }
 0x18d   :  { %1289 = vmatpush.msra.mxu1 %v1270_v59 }
 0x18e   :  { %v1156_v50 = vadd.f32 %v1152_v46, %v2124_v56 }
 0x18f   :  { %1290 = vmatpush.msra.mxu1 %v1269_v39 }
 0x190   :  { %v1268_v51 = vadd.f32 %v1264_v49, %v1156_v50 }
 0x192   :  { %1291 = vmatpush.msra.mxu1 %v1268_v51 }
 0x193   :  { %1645 = vmatmul.msk.f32.vlgmr.msra.gmra.mxu1 %vm1272_vm3, %v87_v52 }
 0x210   :  { %v1293_v5 = vpop.f32.mrf.mxu1 }
 0x211   :  { %1296 = vst [vmem:[#allocation10] sm:$0xff] %v1293_v5 }
 0x212   :  { %1307 = dma.vmem_to_hbm [thread:$0]  %s1303_s3, 128, %s1305_s13, [#allocation4]  }
 0x213   :  { %1925 = dma.done.wait [#allocation4], 128  }
 0x214   :  { %1926 = vsyncadd [#allocation4], 4294967168 }
 0x215   :  { %1312 = vsyncpa [#allocation3], 1 }
 0x216   :  { %1313 = vsyncpa [#allocation6], 1 }
 0x217   :  { %1314 = vsyncpa [#allocation9], 1 }
 0x218   :  { %1315 = vsyncpa [#allocation4], 1 }

</bundles_post_ra>
